<compile_context>
chip_gen: v5e
topology: v5e:2x2
jax: 0.10.0
libtpu: 0.0.40
codegen_flags: <defaults>
</compile_context>

<pallas_src>
import jax
import jax.numpy as jnp
from jax.experimental import pallas as pl
from jax.experimental.pallas import tpu as pltpu


def _group_quant_kernel(x_ref, o_ref, rawmax_ref, deqmax_ref):
    """Quantize/de-quantize a block of whole 3-channel codec groups.

    x_ref / o_ref        : (gb, R, 128) float32 VMEM blocks, one flattened group
                           per leading index.
    rawmax_ref/deqmax_ref: (gb, 1, 128) float32 per-group stats (value broadcast
                           over the lane dim): raw input max and de-quantized
                           output max.  They replace the wrapper's full-array
                           max() reductions for the pre/post scale decisions.
    """
    x = x_ref[...]
    gb = x.shape[0]

    def _rmax(a):
        return jnp.max(jnp.max(a, axis=2, keepdims=True), axis=1, keepdims=True)

    def _rmin(a):
        return jnp.min(jnp.min(a, axis=2, keepdims=True), axis=1, keepdims=True)

    max_v = _rmax(x)                       # (gb, 1, 1)
    min_v = _rmin(x)                       # (gb, 1, 1)

    # 'in_group' normalization: space = (max - min) / 256 (exactly as reference).
    # Guard constant groups (the reference would produce NaN via 0/0).
    space = (max_v - min_v) * (1.0 / 256.0)
    space = jnp.where(space > 0.0, space, 1.0)
    inv_space = 1.0 / space                # hoisted: one divide per group

    q = jnp.round((x - min_v) * inv_space)
    # frames.astype(np.uint8): non-negative rounded floats wrap modulo 256
    # (the group maximum maps to 256 -> 0, same as the PyTorch reference).
    q = jnp.bitwise_and(q.astype(jnp.int32), 255).astype(jnp.float32)

    # TODO(synk): the H.265 encode/decode (ffmpeg/libx265 subprocess) and its
    # file-size-based bit cost have no Pallas equivalent; modeled here as a
    # lossless uint8 round trip with zero codec bits.

    deq = q * space + min_v                # de-quantize: comp * space + min
    o_ref[...] = deq

    rawmax_ref[...] = jnp.broadcast_to(max_v, (gb, 1, 128))
    deqmax_ref[...] = jnp.broadcast_to(_rmax(deq), (gb, 1, 128))


def _pick_groups_per_block(num_groups, group_bytes, target_bytes=2 << 20):
    """Largest divisor of num_groups whose block stays <= target_bytes and,
    when possible, still leaves >= 2 grid steps (so both v7x TensorCores and the
    2-deep DMA pipeline have work)."""
    best = 1
    for cand in range(1, num_groups + 1):
        if num_groups % cand:
            continue
        if cand * group_bytes > target_bytes:
            break
        if num_groups // cand >= 2 or num_groups == 1:
            best = cand
    return best


def _run_group_quant(groups_flat):
    G, R, L = groups_flat.shape
    group_bytes = R * L * 4
    gb = _pick_groups_per_block(G, group_bytes)
    block_bytes = gb * group_bytes
    # input + output blocks, double-buffered, plus slack for the tiny stats.
    vmem_limit = int(min(max(4 * block_bytes + (4 << 20), 16 << 20), 100 << 20))
    # TODO(synk): for very large groups (>~8 MiB, long/high-res videos) the R axis
    # should additionally be tiled (two-phase stats+apply) to fit v7x's 64 MiB VMEM.

    out, rawmax, deqmax = pl.pallas_call(
        _group_quant_kernel,
        out_shape=(
            jax.ShapeDtypeStruct((G, R, L), jnp.float32),
            jax.ShapeDtypeStruct((G, 1, 128), jnp.float32),
            jax.ShapeDtypeStruct((G, 1, 128), jnp.float32),
        ),
        grid=(G // gb,),
        in_specs=[pl.BlockSpec((gb, R, L), lambda i: (i, 0, 0))],
        out_specs=(
            pl.BlockSpec((gb, R, L), lambda i: (i, 0, 0)),
            pl.BlockSpec((gb, 1, 128), lambda i: (i, 0, 0)),
            pl.BlockSpec((gb, 1, 128), lambda i: (i, 0, 0)),
        ),
        compiler_params=pltpu.CompilerParams(
            dimension_semantics=("parallel",),
            vmem_limit_bytes=vmem_limit,
        ),
    )(groups_flat)
    return out, rawmax[:, 0, 0], deqmax[:, 0, 0]


def quantization_h265_forward(x):
    """JAX/Pallas equivalent of Quantization_H265(...).forward with defaults.

    x: (b, c, t, h, w) float32.  Returns (output, bpp_tensor).

    Note: like the PyTorch module (`if input.max() < 2`, `if output.max() > 2`)
    this uses host-side data-dependent branches, so call it eagerly (not jitted).
    """
    b, c, t, h, w = x.shape
    x = x.astype(jnp.float32)

    # Channel grouping into triples, zero-padding the last group (generic-c path;
    # the c in {64, 80, 128, ...} spatial-tiling reshapes of convert_1video are
    # not exercised for this channel count).
    n_groups = -(-c // 3)
    pad_c = n_groups * 3 - c
    if pad_c:
        # TODO(synk): the pad copy could be avoided by masking the ragged last
        # group inside the kernel, at the cost of per-group validity plumbing.
        x_pad = jnp.pad(x, ((0, 0), (0, pad_c), (0, 0), (0, 0), (0, 0)))
    else:
        x_pad = x

    n_elem = 3 * t * h * w
    assert n_elem % 128 == 0, "3*t*h*w must be a multiple of 128 (TPU lane tiling)"
    G = b * n_groups
    groups_flat = x_pad.reshape(G, n_elem // 128, 128)   # lane-dense, (8,128)-tiled view

    out_flat, raw_max_g, deq_max_g = _run_group_quant(groups_flat)

    # --- `if input.max() < 2: input *= 255` ----------------------------------
    # Quantization is invariant to a uniform scale, so the prescale is folded into
    # scalars instead of an extra full-tensor read + per-element multiply.
    # (Zero padding only adds a max candidate of 0.0 < 2, so the decision matches
    # max() over the unpadded input exactly.)
    raw_max_all = jnp.max(raw_max_g)

    # --- `if output.max() > 2: output /= 255` ---------------------------------
    # Derived from per-group de-quantized maxima.  The zero-padded channels of the
    # last group are excluded exactly like the reference's `[0:c]` truncation, via
    # a tiny slice read instead of a full-array pass.
    if pad_c:
        deq_pg = deq_max_g.reshape(b, n_groups)
        last_real = out_flat.reshape(b, n_groups, 3, t, h, w)[:, -1, :3 - pad_c]
        deq_raw_max = jnp.max(last_real)
        if n_groups > 1:
            deq_raw_max = jnp.maximum(deq_raw_max, jnp.max(deq_pg[:, :-1]))
    else:
        deq_raw_max = jnp.max(deq_max_g)

    # Single device->host transfer for both decision scalars.
    raw_max_f, deq_max_f = [float(v) for v in
                            jax.device_get(jnp.stack([raw_max_all, deq_raw_max]))]
    s_in = 255.0 if raw_max_f < 2.0 else 1.0
    s_out = (1.0 / 255.0) if deq_max_f * s_in > 2.0 else 1.0

    out = out_flat.reshape(b, n_groups * 3, t, h, w)[:, :c]
    combined = s_in * s_out
    if combined != 1.0:   # common case (255 * 1/255 == 1) skips this whole pass
        out = out * jnp.float32(combined)

    # bpp per batch item: per group, codec bit cost (0 here, see kernel TODO)
    # + 32*2 bits for the transmitted (min, space) header.
    bpp = jnp.full((b,), float(n_groups) * 64.0, dtype=jnp.float32)
    return out, bpp


def _reference_forward(x):
    """Pure-JAX mirror of the module's math (codec modeled as lossless), for tests."""
    b, c, t, h, w = x.shape
    x = x.astype(jnp.float32)
    n_groups = -(-c // 3)
    pad_c = n_groups * 3 - c
    xp = (jnp.pad(x, ((0, 0), (0, pad_c), (0, 0), (0, 0), (0, 0)))
          if pad_c else x)
    g = xp.reshape(b * n_groups, 3 * t * h * w)
    max_v = jnp.max(g, axis=1, keepdims=True)
    min_v = jnp.min(g, axis=1, keepdims=True)
    space = (max_v - min_v) * (1.0 / 256.0)
    space = jnp.where(space > 0.0, space, 1.0)
    q = jnp.round((g - min_v) * (1.0 / space))
    q = jnp.bitwise_and(q.astype(jnp.int32), 255).astype(jnp.float32)
    deq = q * space + min_v
    out = deq.reshape(b, n_groups * 3, t, h, w)[:, :c]
    s_in = 255.0 if float(jnp.max(x)) < 2.0 else 1.0
    s_out = (1.0 / 255.0) if float(jnp.max(out)) * s_in > 2.0 else 1.0
    if s_in * s_out != 1.0:
        out = out * jnp.float32(s_in * s_out)
    bpp = jnp.full((b,), float(n_groups) * 64.0, dtype=jnp.float32)
    return out, bpp


if __name__ == "__main__":
    key = jax.random.PRNGKey(0)
    b, c, t, h, w = 2, 4, 4, 16, 16
    x = jax.random.uniform(key, (b, c, t, h, w), dtype=jnp.float32)

    out, bpp = quantization_h265_forward(x)
    out = jax.block_until_ready(out)
    bpp = jax.block_until_ready(bpp)

    assert out.shape == (b, c, t, h, w), out.shape
    assert bpp.shape == (b,), bpp.shape
    assert bool(jnp.all(jnp.isfinite(out)))

    # Pallas output must match the pure-JAX mirror of the module's math.
    out_ref, bpp_ref = _reference_forward(x)
    max_err = float(jnp.max(jnp.abs(out - out_ref)))
    assert max_err < 5e-3, max_err
    assert float(jnp.max(jnp.abs(bpp - bpp_ref))) < 1e-6

    # The quantize/de-quantize round trip reconstructs nearly all elements; as in
    # the reference, each group's maximum wraps (uint8 cast of 256) to ~min, so
    # only a handful of elements per group carry a large error.
    frac_ok = float(jnp.mean((jnp.abs(out - x) < 1e-2).astype(jnp.float32)))
    assert frac_ok > 0.97, frac_ok

    print("KERNEL_OK")
</pallas_src>

<mosaic_0001>
module attributes {stable_mosaic.version = 11 : i64} {
  func.func @_group_quant_kernel(%arg0: i32, %arg1: memref<2x24x128xf32, #tpu.memory_space<vmem>>, %arg2: memref<2x24x128xf32, #tpu.memory_space<vmem>>, %arg3: memref<2x1x128xf32, #tpu.memory_space<vmem>>, %arg4: memref<2x1x128xf32, #tpu.memory_space<vmem>>) attributes {dimension_semantics = [#tpu.dimension_semantics<parallel>], iteration_bounds = array<i64: 2>, scalar_prefetch = 0 : i64, scratch_operands = 0 : i64, tpu.core_type = #tpu.core_type<tc>, window_params = [{transform_indices = @transform_0, window_bounds = array<i64: 2, 24, 128>}, {transform_indices = @transform_1, window_bounds = array<i64: 2, 24, 128>}, {transform_indices = @transform_2, window_bounds = array<i64: 2, 1, 128>}, {transform_indices = @transform_3, window_bounds = array<i64: 2, 1, 128>}]} {
    %c0 = arith.constant 0 : index
    %c0_0 = arith.constant 0 : index
    %c0_1 = arith.constant 0 : index
    %0 = vector.load %arg1[%c0, %c0_0, %c0_1] : memref<2x24x128xf32, #tpu.memory_space<vmem>>, vector<2x24x128xf32>
    %cst = arith.constant dense<0xFF800000> : vector<2x24xf32>
    %1 = vector.multi_reduction <maximumf>, %0, %cst [2] : vector<2x24x128xf32> to vector<2x24xf32>
    %2 = vector.shape_cast %1 : vector<2x24xf32> to vector<2x24x1xf32>
    %cst_2 = arith.constant dense<0xFF800000> : vector<2x1xf32>
    %3 = vector.multi_reduction <maximumf>, %2, %cst_2 [1] : vector<2x24x1xf32> to vector<2x1xf32>
    %4 = vector.shape_cast %3 : vector<2x1xf32> to vector<2x1x1xf32>
    %cst_3 = arith.constant dense<0x7F800000> : vector<2x24xf32>
    %5 = vector.multi_reduction <minimumf>, %0, %cst_3 [2] : vector<2x24x128xf32> to vector<2x24xf32>
    %6 = vector.shape_cast %5 : vector<2x24xf32> to vector<2x24x1xf32>
    %cst_4 = arith.constant dense<0x7F800000> : vector<2x1xf32>
    %7 = vector.multi_reduction <minimumf>, %6, %cst_4 [1] : vector<2x24x1xf32> to vector<2x1xf32>
    %8 = vector.shape_cast %7 : vector<2x1xf32> to vector<2x1x1xf32>
    %9 = arith.subf %4, %8 : vector<2x1x1xf32>
    %cst_5 = arith.constant 3.906250e-03 : f32
    %10 = vector.broadcast %cst_5 : f32 to vector<2x1x1xf32>
    %11 = arith.mulf %9, %10 : vector<2x1x1xf32>
    %cst_6 = arith.constant 0.000000e+00 : f32
    %12 = vector.broadcast %cst_6 : f32 to vector<2x1x1xf32>
    %13 = arith.cmpf ogt, %11, %12 : vector<2x1x1xf32>
    %cst_7 = arith.constant 1.000000e+00 : f32
    %14 = vector.broadcast %cst_7 : f32 to vector<2x1x1xf32>
    %15 = arith.select %13, %11, %14 : vector<2x1x1xi1>, vector<2x1x1xf32>
    %cst_8 = arith.constant 1.000000e+00 : f32
    %16 = vector.broadcast %cst_8 : f32 to vector<2x1x1xf32>
    %17 = arith.divf %16, %15 : vector<2x1x1xf32>
    %18 = vector.broadcast %8 : vector<2x1x1xf32> to vector<2x24x128xf32>
    %19 = arith.subf %0, %18 : vector<2x24x128xf32>
    %20 = vector.broadcast %17 : vector<2x1x1xf32> to vector<2x24x128xf32>
    %21 = arith.mulf %19, %20 : vector<2x24x128xf32>
    %22 = math.roundeven %21 : vector<2x24x128xf32>
    %23 = arith.fptosi %22 : vector<2x24x128xf32> to vector<2x24x128xi32>
    %c255_i32 = arith.constant 255 : i32
    %24 = vector.broadcast %c255_i32 : i32 to vector<2x24x128xi32>
    %25 = arith.andi %23, %24 : vector<2x24x128xi32>
    %26 = arith.sitofp %25 : vector<2x24x128xi32> to vector<2x24x128xf32>
    %27 = vector.broadcast %15 : vector<2x1x1xf32> to vector<2x24x128xf32>
    %28 = arith.mulf %26, %27 : vector<2x24x128xf32>
    %29 = vector.broadcast %8 : vector<2x1x1xf32> to vector<2x24x128xf32>
    %30 = arith.addf %28, %29 : vector<2x24x128xf32>
    %c0_9 = arith.constant 0 : index
    %c0_10 = arith.constant 0 : index
    %c0_11 = arith.constant 0 : index
    %31 = vector.load %arg2[%c0_9, %c0_10, %c0_11] : memref<2x24x128xf32, #tpu.memory_space<vmem>>, vector<2x24x128xf32>
    tpu.vector_store %arg2[%c0_9, %c0_10, %c0_11], %30 {strides = array<i32>} : memref<2x24x128xf32, #tpu.memory_space<vmem>>, vector<2x24x128xf32>,
    %32 = vector.shape_cast %4 : vector<2x1x1xf32> to vector<2x1x1xf32>
    %33 = vector.broadcast %32 : vector<2x1x1xf32> to vector<2x1x128xf32>
    %c0_12 = arith.constant 0 : index
    %c0_13 = arith.constant 0 : index
    %c0_14 = arith.constant 0 : index
    %34 = vector.load %arg3[%c0_12, %c0_13, %c0_14] : memref<2x1x128xf32, #tpu.memory_space<vmem>>, vector<2x1x128xf32>
    tpu.vector_store %arg3[%c0_12, %c0_13, %c0_14], %33 {strides = array<i32>} : memref<2x1x128xf32, #tpu.memory_space<vmem>>, vector<2x1x128xf32>,
    %cst_15 = arith.constant dense<0xFF800000> : vector<2x24xf32>
    %35 = vector.multi_reduction <maximumf>, %30, %cst_15 [2] : vector<2x24x128xf32> to vector<2x24xf32>
    %36 = vector.shape_cast %35 : vector<2x24xf32> to vector<2x24x1xf32>
    %cst_16 = arith.constant dense<0xFF800000> : vector<2x1xf32>
    %37 = vector.multi_reduction <maximumf>, %36, %cst_16 [1] : vector<2x24x1xf32> to vector<2x1xf32>
    %38 = vector.shape_cast %37 : vector<2x1xf32> to vector<2x1x1xf32>
    %39 = vector.shape_cast %38 : vector<2x1x1xf32> to vector<2x1x1xf32>
    %40 = vector.broadcast %39 : vector<2x1x1xf32> to vector<2x1x128xf32>
    %c0_17 = arith.constant 0 : index
    %c0_18 = arith.constant 0 : index
    %c0_19 = arith.constant 0 : index
    %41 = vector.load %arg4[%c0_17, %c0_18, %c0_19] : memref<2x1x128xf32, #tpu.memory_space<vmem>>, vector<2x1x128xf32>
    tpu.vector_store %arg4[%c0_17, %c0_18, %c0_19], %40 {strides = array<i32>} : memref<2x1x128xf32, #tpu.memory_space<vmem>>, vector<2x1x128xf32>,
    return
  }
  func.func @transform_0(%arg0: i32) -> (i32, i32, i32) {
    %c0_i32 = arith.constant 0 : i32
    %c0_i32_0 = arith.constant 0 : i32
    %c0_i32_1 = arith.constant 0 : i32
    return %arg0, %c0_i32, %c0_i32_0 : i32, i32, i32
  }
  func.func @transform_1(%arg0: i32) -> (i32, i32, i32) {
    %c0_i32 = arith.constant 0 : i32
    %c0_i32_0 = arith.constant 0 : i32
    %c0_i32_1 = arith.constant 0 : i32
    return %arg0, %c0_i32, %c0_i32_0 : i32, i32, i32
  }
  func.func @transform_2(%arg0: i32) -> (i32, i32, i32) {
    %c0_i32 = arith.constant 0 : i32
    %c0_i32_0 = arith.constant 0 : i32
    %c0_i32_1 = arith.constant 0 : i32
    return %arg0, %c0_i32, %c0_i32_0 : i32, i32, i32
  }
  func.func @transform_3(%arg0: i32) -> (i32, i32, i32) {
    %c0_i32 = arith.constant 0 : i32
    %c0_i32_0 = arith.constant 0 : i32
    %c0_i32_1 = arith.constant 0 : i32
    return %arg0, %c0_i32, %c0_i32_0 : i32, i32, i32
  }
}

</mosaic_0001>

<bundles_post_ra>
// kernel: tpu_custom_call.1
= control target key start
LH: loop header
LB: loop body
LE: loop exit
PB: predicated region body
PF: predicated region fallthrough
CT: control target
= control target key end

     0   :  { %9 = vsyncpa [#allocation3], 0  ;;  %s1133_s0 = inlined_call_operand.hbm [shape: f32[4,24,128], index: 0, kind: input, shape index: {}]   ;;  %s1134_s1 = inlined_call_operand.hbm [shape: f32[4,24,128], index: 1, kind: output, shape index: {0}]   ;;  %s1135_s2 = inlined_call_operand.hbm [shape: f32[4,1,128], index: 2, kind: output, shape index: {1}]   ;;  %s1136_s3 = inlined_call_operand.hbm [shape: f32[4,1,128], index: 3, kind: output, shape index: {2}]  }
   0x1   :  { %11 = vsyncpa [#allocation3 + $0x1], 0 }
   0x2   :  { %12 = vsyncpa [#allocation4], 0 }
   0x3   :  { %14 = vsyncpa [#allocation4 + $0x1], 0 }
   0x4   :  { %15 = vsyncpa [#allocation7], 0 }
   0x5   :  { %17 = vsyncpa [#allocation7 + $0x1], 0  ;;  %s879_s12 = smov 0   ;;  %s881_s13 = smov 0  }
   0x6   :  { %s883_s14 = smov 0   ;;  %s885_s15 = smov 0  }
   0x7 LB: > { %s900_s16 = sadd.s32 4294967295, %s851_s15   ;;  %s1137_s17 = sadd.s32 4294967294, %s851_s15   ;;  %s851_s15 = sphi %s885_s15, %s1150_s15   ;;  %s847_s14 = sphi %s883_s14, %s1149_s14   ;;  %s843_s13 = sphi %s881_s13, %s1148_s13   ;;  %s839_s12 = sphi %s879_s12, %s1147_s12  }
   0x8   : > { %s904_s18 = sadd.s32 1, %s851_s15   ;;  %s30_s19 = sadd.s32 1, %s847_s14 }
   0x9   : > { %s27_s20 = ssub.s32 %s851_s15, %s904_s18  ;;  %p37_p0 = scmp.ne.s32.totalorder %s847_s14, %s843_s13 }
   0xa   : > { %p28_p1 = scmp.eq.s32.totalorder %s27_s20, 0  ;;  %p38_p2 = scmp.eq.s32.totalorder %s851_s15, 0 }
   0xb   : > { %p43_p3 = scmp.ne.s32.totalorder %s843_s13, %s839_s12  ;;  %p44_p4 = scmp.eq.s32.totalorder %s900_s16, 0 }
   0xc   : > { %s916_s21 = scalar_select %p28_p1, %s847_s14, %s30_s19  }
   0xd   : > { %p39_p5 = por %p38_p2, %p37_p0  ;;  %p918_p6 = por %p44_p4, %p43_p3 }
   0xe   : > { %p67_p7 = scmp.eq.s32.totalorder %s900_s16, 1  ;;  %p73_p8 = scmp.eq.s32.totalorder %s1137_s17, 1 }
   0xf   : > { %p591_p9 = scmp.ge.s32.totalorder %s851_s15, 2  ;;  %p651_p10 = scmp.lt.s32.totalorder %s851_s15, 2 }
  0x10   : > { %p927_p11 = por %p67_p7, %p37_p0  ;;  %p931_p12 = por %p73_p8, %p43_p3 }
  0x11   : > { %s145_s25 = sand.u32 1, %s847_s14   ;;  %s608_s26 = smul.u32 48, %s851_s15 }
  0x12   : > { %s607_s27 = smul.u32 48, %s145_s25  ;;  %p940_p13 = pnand %p651_p10, %p39_p5 }
  0x13   : > { %s155_s30 = scalar_lea.hbm %s1133_s0, %s608_s26  ;;  %s146_s8 = scalar_lea.sflag [#allocation3], %s145_s25 }
  0x14   : > { %s156_s5 = sshll.u32 %s155_s30, 4  ;;  %s149_s6 = scalar_lea.vmem [#allocation2], %s607_s27  ;;  %s157_s5 = int_to_ptr.hbm [resolvable:$true] %s156_s5 }
  0x15   : > { %s158_s7 = sshll.u32 %s149_s6, 4  ;;  %s695_s9 = sshra.s32 %s157_s5, 4  ;;  %s159_s7 = int_to_ptr.vmem [resolvable:$true] %s158_s7  ;;  %s696_s9 = int_to_ptr.hbm [resolvable:$true] %s695_s9 }
  0x16   : > { %s697_s10 = scalar_lea.hbm %s696_s9, 48  ;;  %p699_p1 = pneg %p940_p13 }
  0x17   : > { %p698_p0 = scmp.ne.s32.totalorder %s696_s9, %s697_s10  ;;  %s702_s20 = scalar_lea.hbm %s1133_s0, 96 }
  0x18   : > { %p703_p4 = scmp.lt.s32.totalorder %s696_s9, %s1133_s0  ;;  %p704_p5 = scmp.lt.s32.totalorder %s702_s20, %s697_s10 }
  0x19   : > { %p700_p2 = pnand %p699_p1, %p698_p0 }
  0x1a   : > { %p705_p7 = por %p704_p5, %p703_p4 }
  0x1b   : > { %p701_p3 = pneg %p700_p2 }
  0x1d   : > { %p706_p8 = pnand %p705_p7, %p701_p3 }
  0x1f   : > { %709 = shalt.err (!%p706_p8)
}
  0x20   : > { %s853_s25 = smov 128   ;;  %s854_s27 = smov 8  }
  0x21   : > { %640 = dma.hbm_to_vmem [thread:$0]  (!%p940_p13), %s157_s5, 768, %s159_s7, %s146_s8, %s853_s25, %s853_s25, %s854_s27  }
  0x22   : > { %p595_p10 = scmp.ge.s32.totalorder %s851_s15, 1  ;;  %p166_p0 = scmp.lt.s32.totalorder %s851_s15, 3 }
  0x24   : > { %p167_p1 = pnand %p595_p10, %p166_p0 }
  0x25   : > { %s957_s29 = sand.u32 (!%p167_p1), 1, %s843_s13  }
  0x26   : > { %170 = sbr.rel (%p167_p1) target bundleno = 378 (0x17a), region = 24  ;;  %s173_s6 = scalar_lea.sflag (!%p167_p1), [#allocation3], %s957_s29 }
  0x27   : > { %s609_s30 = smul.u32 (!%p167_p1), 48, %s957_s29 }
  0x29   : > { %s176_s9 = scalar_lea.vmem (!%p167_p1), [#allocation2], %s609_s30 }
  0x2b   : > { %826 = dma.done.wait (%p918_p6), %s173_s6, 768  }
  0x2c   : > { %828 = vsyncadd (%p918_p6), %s173_s6, 4294966528  ;;  %v967_v0 = vld [vmem:[%s176_s9 + $0x18] sm:$0xff]  ;;  %v969_v1 = vld [vmem:[%s176_s9] sm:$0xff]  ;;  %s1138_s22 = sshll.u32 %s957_s29, 1  ;;  %s1042_s5 = scalar_lea.vmem [#allocation5], %s609_s30 }
  0x2d   : > { %226 = vmax.xlane.f32.xlu1 %v967_v0  ;;  %248 = vmin.xlane.f32.xlu2 %v969_v1  ;;  %v974_v2 = vld [vmem:[%s176_s9 + $0x28] sm:$0xff]  ;;  %v976_v3 = vld [vmem:[%s176_s9 + $0x10] sm:$0xff]  ;;  %v986_v5 = vld [vmem:[%s176_s9 + $0x20] sm:$0xff]  ;;  %s994_s4 = scalar_lea.vmem [#allocation6], %s1138_s22  ;;  %s399_s8 = sand.u32 1, %s900_s16  }
  0x2e   : > { %220 = vmax.xlane.f32.xlu0 %v969_v1  ;;  %v981_v4 = vld [vmem:[%s176_s9 + $0x8] sm:$0xff]  ;;  %s434_s7 = sshll.u32 %s994_s4, 4  ;;  %s603_s10 = sshll.u32 %s900_s16, 1  ;;  %s435_s7 = int_to_ptr.vmem [resolvable:$true] %s434_s7 }
  0x2f   : > { %s433_s20 = scalar_lea.hbm %s1135_s2, %s603_s10  ;;  %s418_s28 = sshll.u32 %s1042_s5, 4  ;;  %s419_s28 = int_to_ptr.vmem [resolvable:$true] %s418_s28 }
  0x30   : > { %s436_s26 = sshll.u32 %s433_s20, 4  ;;  %s1061_s25 = scalar_lea.sflag [#allocation7], %s399_s8  ;;  %s437_s26 = int_to_ptr.hbm [resolvable:$true] %s436_s26 }
  0x31   : > { %s739_s27 = sshra.s32 %s437_s26, 4  ;;  %s740_s27 = int_to_ptr.hbm [resolvable:$true] %s739_s27 }
  0x32   : > { %s741_s30 = scalar_lea.hbm %s740_s27, 2  ;;  %p746_p3 = scmp.lt.s32.totalorder %s740_s27, %s1135_s2 }
  0x33   : > { %p742_p6 = scmp.ne.s32.totalorder %s740_s27, %s741_s30 }
  0x35   : > { %230 = vmax.xlane.f32.xlu1 %v974_v2  ;;  %252 = vmin.xlane.f32.xlu2 %v976_v3  ;;  %p743_p13 = pnand %p742_p6, %p927_p11 }
  0x36   : > { %224 = vmax.xlane.f32.xlu0 %v976_v3 }
  0x37   : > { %p744_p2 = pneg %p743_p13 }
  0x3d   : > { %258 = vmin.xlane.f32.xlu1 %v974_v2  ;;  %222 = vmax.xlane.f32.xlu2 %v981_v4 }
  0x3e   : > { %254 = vmin.xlane.f32.xlu0 %v967_v0 }
  0x45   : > { %250 = vmin.xlane.f32.xlu1 %v981_v4  ;;  %256 = vmin.xlane.f32.xlu2 %v986_v5 }
  0x46   : > { %228 = vmax.xlane.f32.xlu0 %v986_v5 }
  0xa0   : > { %v227_v6 = vpop.xlane.xlu1 %226  ;;  %v249_v7 = vpop.xlane.xlu2 %248 }
  0xa1   : > { %v221_v8 = vpop.xlane.xlu0 %220 }
  0xa8   : > { %v231_v9 = vpop.xlane.xlu1 %230  ;;  %v253_v10 = vpop.xlane.xlu2 %252 }
  0xa9   : > { %v225_v11 = vpop.xlane.xlu0 %224  ;;  %v260_v19 = vmin.f32 %v249_v7, %v253_v10  ;;  %v240_v22 = vmax.f32 %v227_v6, %v231_v9 }
  0xaa   : > { %v232_v12 = vmax.f32 %v221_v8, %v225_v11 }
  0xb0   : > { %v259_v13 = vpop.xlane.xlu1 %258  ;;  %v223_v14 = vpop.xlane.xlu2 %222 }
  0xb1   : > { %v233_v15 = vmax.f32 %v232_v12, %v223_v14  ;;  %v255_v16 = vpop.xlane.xlu0 %254 }
  0xb2   : > { %v268_v21 = vmin.f32 %v255_v16, %v259_v13 }
  0xb3   : > { %v234_v17 = vrot.slane %v233_v15, 4 }
  0xb5   : > { %v235_v18 = vmax.f32 %v233_v15, %v234_v17 }
  0xb7   : > { %v236_v20 = vrot.slane %v235_v18, 2 }
  0xb8   : > { %v251_v23 = vpop.xlane.xlu1 %250  ;;  %v257_v24 = vpop.xlane.xlu2 %256 }
  0xb9   : > { %v237_v25 = vmax.f32 %v235_v18, %v236_v20  ;;  %v261_v26 = vmin.f32 %v260_v19, %v251_v23  ;;  %v269_v27 = vmin.f32 %v268_v21, %v257_v24  ;;  %v229_v28 = vpop.xlane.xlu0 %228 }
  0xba   : > { %v241_v29 = vmax.f32 %v240_v22, %v229_v28 }
  0xbb   : > { %v238_v30 = vrot.slane %v237_v25, 1  ;;  %v262_v31 = vrot.slane %v261_v26, 4  ;;  %v270_v32 = vrot.slane %v269_v27, 4 }
  0xbc   : > { %v242_v33 = vrot.slane %v241_v29, 4 }
  0xbd   : > { %v239_v34 = vmax.f32 %v237_v25, %v238_v30  ;;  %v263_v35 = vmin.f32 %v261_v26, %v262_v31  ;;  %v271_v36 = vmin.f32 %v269_v27, %v270_v32 }
  0xbe   : > { %v243_v37 = vmax.f32 %v241_v29, %v242_v33 }
  0xbf   : > { %362 = vst [vmem:[%s994_s4] sm:$0x1] %v239_v34  ;;  %v264_v38 = vrot.slane %v263_v35, 2  ;;  %v272_v39 = vrot.slane %v271_v36, 2 }
  0xc0   : > { %v244_v40 = vrot.slane %v243_v37, 2 }
  0xc1   : > { %v265_v41 = vmin.f32 %v263_v35, %v264_v38  ;;  %v273_v42 = vmin.f32 %v271_v36, %v272_v39 }
  0xc2   : > { %v245_v43 = vmax.f32 %v243_v37, %v244_v40 }
  0xc3   : > { %v266_v44 = vrot.slane %v265_v41, 1  ;;  %v274_v45 = vrot.slane %v273_v42, 1 }
  0xc4   : > { %v246_v46 = vrot.slane %v245_v43, 1 }
  0xc5   : > { %v997_v47 = vmin.f32 %v265_v41, %v266_v44  ;;  %v999_v48 = vmin.f32 %v273_v42, %v274_v45 }
  0xc6   : > { %v247_v49 = vmax.f32 %v245_v43, %v246_v46 }
  0xc7   : > { %v276_v50 = vsub.f32 %v239_v34, %v997_v47  ;;  %v316_v8 = vsub.f32 %v976_v3, %v997_v47  ;;  %v314_v12 = vsub.f32 %v969_v1, %v997_v47  ;;  %v317_v13 = vsub.f32 %v967_v0, %v999_v48 }
  0xc8   : > { %v277_v51 = vsub.f32 %v247_v49, %v999_v48  ;;  %363 = vst [vmem:[%s994_s4 + $0x1] sm:$0x1] %v247_v49  ;;  %v315_v3 = vsub.f32 %v981_v4, %v997_v47  ;;  %v319_v18 = vsub.f32 %v974_v2, %v999_v48  ;;  %v318_v0 = vsub.f32 %v986_v5, %v999_v48  ;;  %s745_s4 = scalar_lea.hbm %s1135_s2, 4 }
  0xc9   : > { %v278_v52 = vmul.f32 0.00390625, %v276_v50  ;;  %p747_p4 = scmp.lt.s32.totalorder %s745_s4, %s741_s30 }
  0xca   : > { %v279_v53 = vmul.f32 0.00390625, %v277_v51 }
  0xcb   : > { %vm280_vm0 = vcmp.gt.f32.partialorder %v278_v52, 0.0  ;;  %p748_p5 = por %p747_p4, %p746_p3 }
  0xcc   : > { %vm281_vm1 = vcmp.gt.f32.partialorder %v279_v53, 0.0  ;;  %v1004_v54 = vsel %vm280_vm0, %v278_v52, 1.0 }
  0xcd   : > { %v1006_v55 = vsel %vm281_vm1, %v279_v53, 1.0  ;;  %691 = vrcp.f32 %v1004_v54  ;;  %v295_v61 = vand.u32 2147483648, %v1004_v54  ;;  %v293_v6 = vand.u32 2147483647, %v1004_v54  ;;  %p749_p7 = pnand %p748_p5, %p744_p2 }
  0xce   : > { %693 = vrcp.f32 %v1006_v55  ;;  %v310_v7 = vand.u32 2147483648, %v1006_v55  ;;  %v308_v10 = vand.u32 2147483647, %v1006_v55  ;;  %vm289_vm4 = vweird.f32 %v1004_v54 }
  0xcf   : > { %v296_v14 = vor.u32 1.1754944e-38, %v295_v61  ;;  %vm304_vm6 = vweird.f32 %v1006_v55  ;;  %vm294_vm7 = vcmp.eq.f32.partialorder %v293_v6, 8.507059e+37 }
  0xd0   : > { %v311_v17 = vor.u32 1.1754944e-38, %v310_v7  ;;  %vm309_vm9 = vcmp.eq.f32.partialorder %v308_v10, 8.507059e+37 }
  0xd3   : > { %v692_v56 = vpop.eup %691 }
  0xd4   : > { %v694_v57 = vpop.eup %693  ;;  %v285_v58 = vmul.f32 %v692_v56, %v1004_v54  ;;  %vm290_vm2 = vweird.f32 %v692_v56 }
  0xd5   : > { %v300_v59 = vmul.f32 %v694_v57, %v1006_v55  ;;  %vm305_vm3 = vweird.f32 %v694_v57  ;;  %vm291_vm5 = vmor %vm289_vm4, %vm290_vm2 }
  0xd6   : > { %v286_v60 = vsub.f32 1.0, %v285_v58  ;;  %vm306_vm8 = vmor %vm304_vm6, %vm305_vm3 }
  0xd7   : > { %v301_v62 = vsub.f32 1.0, %v300_v59 }
  0xd8   : > { %v287_v63 = vmul.f32 %v692_v56, %v286_v60 }
  0xd9   : > { %v302_v9 = vmul.f32 %v694_v57, %v301_v62 }
  0xda   : > { %v288_v11 = vadd.f32 %v692_v56, %v287_v63 }
  0xdb   : > { %v303_v15 = vadd.f32 %v694_v57, %v302_v9 }
  0xdc   : > { %v292_v16 = vsel %vm291_vm5, %v692_v56, %v288_v11 }
  0xdd   : > { %v297_v19 = vsel %vm294_vm7, %v296_v14, %v292_v16  ;;  %v307_v1 = vsel %vm306_vm8, %v694_v57, %v303_v15 }
  0xde   : > { %v322_v20 = vmul.f32 %v316_v8, %v297_v19  ;;  %v320_v21 = vmul.f32 %v314_v12, %v297_v19  ;;  %v312_v22 = vsel %vm309_vm9, %v311_v17, %v307_v1  ;;  %v321_v23 = vmul.f32 %v315_v3, %v297_v19 }
  0xdf   : > { %v323_v24 = vmul.f32 %v317_v13, %v312_v22  ;;  %v325_v25 = vmul.f32 %v319_v18, %v312_v22  ;;  %v324_v4 = vmul.f32 %v318_v0, %v312_v22 }
  0xe0   : > { %v618_v26 = vcvt.f32.s32 %v322_v20  ;;  %v612_v27 = vcvt.f32.s32 %v320_v21  ;;  %v615_v28 = vcvt.f32.s32 %v321_v23 }
  0xe1   : > { %v621_v29 = vcvt.f32.s32 %v323_v24  ;;  %v627_v30 = vcvt.f32.s32 %v325_v25  ;;  %v624_v31 = vcvt.f32.s32 %v324_v4 }
  0xe2   : > { %v334_v2 = vand.u32 255, %v618_v26  ;;  %v332_v32 = vand.u32 255, %v612_v27  ;;  %v333_v33 = vand.u32 255, %v615_v28 }
  0xe3   : > { %v335_v34 = vand.u32 255, %v621_v29  ;;  %v337_v35 = vand.u32 255, %v627_v30  ;;  %v336_v36 = vand.u32 255, %v624_v31 }
  0xe4   : > { %v340_v5 = vcvt.s32.f32 %v334_v2  ;;  %v338_v37 = vcvt.s32.f32 %v332_v32  ;;  %v339_v38 = vcvt.s32.f32 %v333_v33 }
  0xe5   : > { %v341_v39 = vcvt.s32.f32 %v335_v34  ;;  %v343_v40 = vcvt.s32.f32 %v337_v35  ;;  %v342_v41 = vcvt.s32.f32 %v336_v36 }
  0xe6   : > { %v346_v42 = vmul.f32 %v340_v5, %v1004_v54  ;;  %v344_v43 = vmul.f32 %v338_v37, %v1004_v54  ;;  %v345_v44 = vmul.f32 %v339_v38, %v1004_v54 }
  0xe7   : > { %v347_v45 = vmul.f32 %v341_v39, %v1006_v55  ;;  %v349_v46 = vmul.f32 %v343_v40, %v1006_v55  ;;  %v348_v49 = vmul.f32 %v342_v41, %v1006_v55 }
  0xe8   : > { %v352_v50 = vadd.f32 %v346_v42, %v997_v47  ;;  %v350_v51 = vadd.f32 %v344_v43, %v997_v47  ;;  %v351_v53 = vadd.f32 %v345_v44, %v997_v47 }
  0xe9   : > { %v353_v52 = vadd.f32 %v347_v45, %v999_v48  ;;  %v355_v54 = vadd.f32 %v349_v46, %v999_v48  ;;  %v354_v47 = vadd.f32 %v348_v49, %v999_v48 }
  0xea   : > { %368 = vmax.xlane.f32.xlu1 %v352_v50  ;;  %358 = vst [vmem:[%s1042_s5 + $0x10] sm:$0xff] %v352_v50  ;;  %364 = vmax.xlane.f32.xlu0 %v350_v51 }
  0xeb   : > { %356 = vst [vmem:[%s1042_s5] sm:$0xff] %v350_v51  ;;  %370 = vmax.xlane.f32.xlu2 %v353_v52 }
  0xec   : > { %359 = vst [vmem:[%s1042_s5 + $0x18] sm:$0xff] %v353_v52 }
  0xed   : > { %357 = vst [vmem:[%s1042_s5 + $0x8] sm:$0xff] %v351_v53 }
  0xee   : > { %361 = vst [vmem:[%s1042_s5 + $0x28] sm:$0xff] %v355_v54 }
  0xef   : > { %360 = vst [vmem:[%s1042_s5 + $0x20] sm:$0xff] %v354_v47 }
  0xf2   : > { %366 = vmax.xlane.f32.xlu1 %v351_v53  ;;  %374 = vmax.xlane.f32.xlu0 %v355_v54 }
  0xf3   : > { %372 = vmax.xlane.f32.xlu2 %v354_v47 }
  0xf4   : > { %752 = shalt.err (!%p749_p7)
}
  0xf5   : > { %s1139_s5 = smov 16   ;;  %s856_s8 = smov 1  }
  0xf6   : > { %632 = dma.vmem_to_hbm [thread:$0]  (%p927_p11), %s435_s7, 32, %s437_s26, %s1061_s25, %s1139_s5, %s1139_s5, %s856_s8  }
  0xf7   : > { %s628_s19 = smul.u32 48, %s900_s16  ;;  %s395_s6 = scalar_lea.sflag [#allocation4], %s957_s29 }
  0xf8   : > { %s773_s7 = scalar_lea.hbm %s1134_s1, 96 }
  0xf9   : > { %s417_s27 = scalar_lea.hbm %s1134_s1, %s628_s19 }
  0xfa   : > { %s420_s30 = sshll.u32 %s417_s27, 4  ;;  %s421_s30 = int_to_ptr.hbm [resolvable:$true] %s420_s30 }
  0xfb   : > { %s767_s9 = sshra.s32 %s421_s30, 4  ;;  %s768_s9 = int_to_ptr.hbm [resolvable:$true] %s767_s9 }
  0xfc   : > { %s769_s4 = scalar_lea.hbm %s768_s9, 48  ;;  %p774_p1 = scmp.lt.s32.totalorder %s768_s9, %s1134_s1 }
  0xfd   : > { %p770_p8 = scmp.ne.s32.totalorder %s768_s9, %s769_s4  ;;  %p775_p6 = scmp.lt.s32.totalorder %s773_s7, %s769_s4 }
  0xff   : > { %p771_p10 = pnand %p770_p8, %p927_p11  ;;  %p776_p13 = por %p775_p6, %p774_p1 }
 0x101   : > { %p772_p0 = pneg %p771_p10 }
 0x103   : > { %p777_p2 = pnand %p776_p13, %p772_p0 }
 0x105   : > { %780 = shalt.err (!%p777_p2)
}
 0x106   : > { %s857_s19 = smov 128   ;;  %s858_s17 = smov 8  }
 0x107   : > { %631 = dma.vmem_to_hbm [thread:$0]  (%p927_p11), %s419_s28, 768, %s421_s30, %s395_s6, %s857_s19, %s857_s19, %s858_s17  }
 0x108   : > { %s449_s5 = scalar_lea.hbm %s1136_s3, %s603_s10  ;;  %s1144_s20 = sshll.u32 %s957_s29, 1 }
 0x109   : > { %s209_s27 = scalar_lea.vmem [#allocation8], %s1144_s20  ;;  %s452_s6 = sshll.u32 %s449_s5, 4  ;;  %s453_s6 = int_to_ptr.hbm [resolvable:$true] %s452_s6 }
 0x10a   : > { %s450_s30 = sshll.u32 %s209_s27, 4  ;;  %s795_s9 = sshra.s32 %s453_s6, 4  ;;  %s451_s30 = int_to_ptr.vmem [resolvable:$true] %s450_s30  ;;  %s796_s9 = int_to_ptr.hbm [resolvable:$true] %s795_s9 }
 0x10b   : > { %s797_s16 = scalar_lea.hbm %s796_s9, 2  ;;  %s801_s29 = scalar_lea.hbm %s1136_s3, 4 }
 0x10c   : > { %p798_p3 = scmp.ne.s32.totalorder %s796_s9, %s797_s16  ;;  %p802_p7 = scmp.lt.s32.totalorder %s796_s9, %s1136_s3 }
 0x10d   : > { %p803_p8 = scmp.lt.s32.totalorder %s801_s29, %s797_s16 }
 0x10e   : > { %p799_p4 = pnand %p798_p3, %p927_p11 }
 0x10f   : > { %p804_p10 = por %p803_p8, %p802_p7 }
 0x110   : > { %p800_p5 = pneg %p799_p4 }
 0x112   : > { %p805_p0 = pnand %p804_p10, %p800_p5 }
 0x15d   : > { %v369_v48 = vpop.xlane.xlu1 %368  ;;  %v365_v55 = vpop.xlane.xlu0 %364 }
 0x15e   : > { %v371_v56 = vpop.xlane.xlu2 %370  ;;  %v376_v57 = vmax.f32 %v365_v55, %v369_v48 }
 0x165   : > { %v367_v58 = vpop.xlane.xlu1 %366  ;;  %v375_v59 = vpop.xlane.xlu0 %374 }
 0x166   : > { %v377_v60 = vmax.f32 %v376_v57, %v367_v58  ;;  %v384_v61 = vmax.f32 %v371_v56, %v375_v59  ;;  %v373_v62 = vpop.xlane.xlu2 %372 }
 0x168   : > { %v378_v63 = vrot.slane %v377_v60, 4  ;;  %v385_v6 = vmax.f32 %v384_v61, %v373_v62 }
 0x16a   : > { %v379_v7 = vmax.f32 %v377_v60, %v378_v63  ;;  %v386_v8 = vrot.slane %v385_v6, 4 }
 0x16c   : > { %v380_v9 = vrot.slane %v379_v7, 2  ;;  %v387_v10 = vmax.f32 %v385_v6, %v386_v8 }
 0x16e   : > { %v381_v11 = vmax.f32 %v379_v7, %v380_v9  ;;  %v388_v12 = vrot.slane %v387_v10, 2 }
 0x170   : > { %v382_v13 = vrot.slane %v381_v11, 1  ;;  %v389_v14 = vmax.f32 %v387_v10, %v388_v12 }
 0x172   : > { %v383_v15 = vmax.f32 %v381_v11, %v382_v13  ;;  %v390_v3 = vrot.slane %v389_v14, 1 }
 0x174   : > { %392 = vst [vmem:[%s209_s27] sm:$0x1] %v383_v15  ;;  %v391_v16 = vmax.f32 %v389_v14, %v390_v3 }
 0x176   : > { %393 = vst [vmem:[%s209_s27 + $0x1] sm:$0x1] %v391_v16 }
 0x177   : > { %808 = shalt.err (!%p805_p0)
}
 0x178   : > { %s1145_s26 = smov 16  }
 0x179   : > { %633 = dma.vmem_to_hbm [thread:$0]  (%p927_p11), %s451_s30, 32, %s453_s6, %s1061_s25, %s1145_s26, %s1145_s26, %s856_s8  }
 0x17a PF: > { %s467_s19 = sand.u32 1, %s839_s12   ;;  %p642_p1 = pnand %p591_p9, %p931_p12 }
 0x17b   : > { %s468_s17 = scalar_lea.sflag [#allocation4], %s467_s19 }
 0x17c   : > { %p643_p6 = pneg %p642_p1 }
 0x17e   : > { %830 = dma.done.wait (%p643_p6), %s468_s17, 768  }
 0x17f   : > { %832 = vsyncadd (%p643_p6), %s468_s17, 4294966528  ;;  %s1146_s22 = sadd.s32 4294967294, %s851_s15  }
 0x180   : > { %s477_s23 = sand.u32 1, %s1146_s22  }
 0x181   : > { %s478_s28 = scalar_lea.sflag [#allocation7], %s477_s23 }
 0x182   : > { %834 = dma.done.wait (%p643_p6), %s478_s28, 64  }
 0x183   : > { %836 = vsyncadd (%p643_p6), %s478_s28, 4294967232  ;;  %p20_p11 = scmp.ge.s32.totalorder %s904_s18, 4   ;;  %s1147_s12 = smov %s843_s13 }
 0x184   : > { %s1148_s13 = smov %s847_s14  ;;  %s1149_s14 = smov %s916_s21 }
 0x185   : > { %s1150_s15 = smov %s904_s18  ;;  %22 = sbr.rel (!%p20_p11) target bundleno = 7 (0x7), region = 101 }
 0x18a   :  { %494 = vsyncpa [#allocation3], 1 }
 0x18b   :  { %496 = vsyncpa [#allocation3 + $0x1], 1 }
 0x18c   :  { %497 = vsyncpa [#allocation4], 1 }
 0x18d   :  { %499 = vsyncpa [#allocation4 + $0x1], 1 }
 0x18e   :  { %500 = vsyncpa [#allocation7], 1 }
 0x18f   :  { %502 = vsyncpa [#allocation7 + $0x1], 1 }

</bundles_post_ra>
